<compile_context>
chip_gen: v7x
topology: tpu7x:2x2x1
jax: 0.10.0
libtpu: 0.0.40
codegen_flags: <defaults>
</compile_context>

<pallas_src>
import math

import jax
import jax.numpy as jnp
from jax.experimental import pallas as pl
from jax.experimental.pallas import tpu as pltpu

LAYER_COUNT = 3
SKIP_CONNECTIONS = True
LANES = 128
TILE_ROWS_MAX = 1024   # 1024 x 128 points per tile (512 KiB / f32 plane)
NUM_CHUNKS = 2         # leading 'parallel' axis for pass 1 (v7x: 2 TensorCores)


def _network(t, w_ref, b_ref, alpha_ref, wf_ref, bf_ref):
    """Tiny 2-wide MLP evaluated on a lane-dense (rows, 128) plane of t.

    Weights/biases/alphas are SMEM scalars broadcast into VPU FMAs.  When
    SKIP_CONNECTIONS is on, the '/2' of the skip connection has already been
    folded into the *next* layer's weights by the wrapper, so it does not
    appear here.
    """
    two_pi = 2.0 * math.pi
    x0 = jnp.cos(two_pi * t)
    x1 = jnp.sin(two_pi * t)

    for i in range(LAYER_COUNT):
        w00 = w_ref[4 * i + 0]
        w01 = w_ref[4 * i + 1]
        w10 = w_ref[4 * i + 2]
        w11 = w_ref[4 * i + 3]
        b0 = b_ref[2 * i + 0]
        b1 = b_ref[2 * i + 1]
        y0 = w00 * x0 + w01 * x1 + b0
        y1 = w10 * x0 + w11 * x1 + b1
        a0 = jnp.tanh(y0)
        a1 = jnp.tanh(y1)
        if SKIP_CONNECTIONS:
            alpha_sq = alpha_ref[i] * alpha_ref[i]
            # (a + alpha^2 * y); the * 0.5 is folded into the next weights.
            x0 = a0 + alpha_sq * y0
            x1 = a1 + alpha_sq * y1
        else:
            x0, x1 = a0, a1

    y0 = wf_ref[0] * x0 + wf_ref[1] * x1 + bf_ref[0]
    y1 = wf_ref[2] * x0 + wf_ref[3] * x1 + bf_ref[1]
    return y0, y1


def _pass1_kernel(n_ref, t_ref, w_ref, b_ref, alpha_ref, wf_ref, bf_ref,
                  stats_ref):
    """Accumulate per-feature sum / min / max of the network output.

    stats_ref block: (1, 6, 8, 128) resident across the 'arbitrary' tile axis:
      [0] sum(y0)   [1] sum(y1)
      [2] min(y0)   [3] min(y1)
      [4] max(y0)   [5] max(y1)
    """
    c = pl.program_id(0)
    i = pl.program_id(1)
    tiles_per_chunk = pl.num_programs(1)
    tile_rows, lanes = t_ref.shape
    tile_pts = tile_rows * lanes

    @pl.when(i == 0)
    def _():
        zero = jnp.zeros((8, lanes), jnp.float32)
        pinf = jnp.full((8, lanes), jnp.inf, jnp.float32)
        stats_ref[0, 0] = zero
        stats_ref[0, 1] = zero
        stats_ref[0, 2] = pinf
        stats_ref[0, 3] = pinf
        stats_ref[0, 4] = -pinf
        stats_ref[0, 5] = -pinf

    n_valid = n_ref[0]
    tile_base = (c * tiles_per_chunk + i) * tile_pts
    remaining = n_valid - tile_base   # points of this tile that are real

    @pl.when(remaining > 0)   # fully-padded tiles skip all work
    def _():
        y0, y1 = _network(t_ref[...], w_ref, b_ref, alpha_ref, wf_ref, bf_ref)
        g = tile_rows // 8

        def update(s0, s1, lo0, lo1, hi0, hi1):
            # Reduce over groups of 8 sublanes only: pure vreg-wise VALU ops.
            r = lambda a: a.reshape(g, 8, lanes)
            stats_ref[0, 0] = stats_ref[0, 0] + jnp.sum(r(s0), axis=0)
            stats_ref[0, 1] = stats_ref[0, 1] + jnp.sum(r(s1), axis=0)
            stats_ref[0, 2] = jnp.minimum(stats_ref[0, 2], jnp.min(r(lo0), axis=0))
            stats_ref[0, 3] = jnp.minimum(stats_ref[0, 3], jnp.min(r(lo1), axis=0))
            stats_ref[0, 4] = jnp.maximum(stats_ref[0, 4], jnp.max(r(hi0), axis=0))
            stats_ref[0, 5] = jnp.maximum(stats_ref[0, 5], jnp.max(r(hi1), axis=0))

        @pl.when(remaining >= tile_pts)      # interior tile: no mask at all
        def _():
            update(y0, y1, y0, y1, y0, y1)

        @pl.when(remaining < tile_pts)       # boundary tile: mask the tail
        def _():
            flat = (
                jax.lax.broadcasted_iota(jnp.int32, (tile_rows, lanes), 0) * lanes
                + jax.lax.broadcasted_iota(jnp.int32, (tile_rows, lanes), 1)
            )
            mask = flat < remaining
            pinf = jnp.float32(jnp.inf)
            update(
                jnp.where(mask, y0, 0.0), jnp.where(mask, y1, 0.0),
                jnp.where(mask, y0, pinf), jnp.where(mask, y1, pinf),
                jnp.where(mask, y0, -pinf), jnp.where(mask, y1, -pinf),
            )


def _pass2_kernel(norm_ref, t_ref, w_ref, b_ref, alpha_ref, wf_ref, bf_ref,
                  out_ref):
    """Recompute the network per tile and write (y - c) * inv, channel-major."""
    y0, y1 = _network(t_ref[...], w_ref, b_ref, alpha_ref, wf_ref, bf_ref)
    c0 = norm_ref[0]
    c1 = norm_ref[1]
    inv = norm_ref[2]
    # Lane-dense, unmasked per-channel stores.  Padded tail points produce
    # finite garbage that the wrapper slices off.
    out_ref[0] = (y0 - c0) * inv
    out_ref[1] = (y1 - c1) * inv


def nignet_forward(t, Ws, bs, alphas, Wf, bf, *, max_tile_rows=TILE_ROWS_MAX):
    """Forward pass of NIGnetNorm.  t: (N, 1) f32 -> (N, 2) f32."""
    n = t.shape[0]

    # ---- host-side constant folding of the skip-connection / 2 ----
    if SKIP_CONNECTIONS:
        Ws = [Ws[0]] + [0.5 * W for W in Ws[1:]]
        Wf = 0.5 * Wf
    w_flat = jnp.concatenate([W.reshape(-1) for W in Ws]).astype(jnp.float32)
    b_flat = jnp.concatenate([b.reshape(-1) for b in bs]).astype(jnp.float32)
    wf_flat = Wf.reshape(-1).astype(jnp.float32)
    bf_flat = bf.reshape(-1).astype(jnp.float32)
    alphas_f = jnp.asarray(alphas, jnp.float32)

    # ---- static tiling arithmetic ----
    rows = -(-n // LANES)                    # ceil(n / 128)
    rows = ((rows + 7) // 8) * 8             # multiple of 8 sublanes
    tile_rows = min(max(8, (max_tile_rows // 8) * 8), rows)
    num_tiles = -(-rows // tile_rows)
    num_chunks = NUM_CHUNKS if num_tiles >= NUM_CHUNKS else 1
    num_tiles = -(-num_tiles // num_chunks) * num_chunks
    tiles_per_chunk = num_tiles // num_chunks
    padded_rows = num_tiles * tile_rows
    padded = padded_rows * LANES

    t_flat = jnp.pad(jnp.ravel(t).astype(jnp.float32), (0, padded - n))
    t2d = t_flat.reshape(padded_rows, LANES)
    n_arr = jnp.array([n], jnp.int32)

    smem_spec = pl.BlockSpec(memory_space=pltpu.MemorySpace.SMEM)
    param_specs = [smem_spec] * 5            # w, b, alpha, wf, bf

    # ---- pass 1: per-chunk sum / min / max statistics ----
    stats = pl.pallas_call(
        _pass1_kernel,
        out_shape=jax.ShapeDtypeStruct((num_chunks, 6, 8, LANES), jnp.float32),
        grid=(num_chunks, tiles_per_chunk),
        in_specs=[
            smem_spec,                                                    # n
            pl.BlockSpec((tile_rows, LANES),
                         lambda c, i: (c * tiles_per_chunk + i, 0)),      # t
        ] + param_specs,
        out_specs=pl.BlockSpec((1, 6, 8, LANES), lambda c, i: (c, 0, 0, 0)),
        compiler_params=pltpu.CompilerParams(
            dimension_semantics=("parallel", "arbitrary")),
    )(n_arr, t2d, w_flat, b_flat, alphas_f, wf_flat, bf_flat)

    # ---- tiny cross-chunk combine + normalization scalars (exact divides) ----
    sums = jnp.sum(stats[:, 0:2], axis=(0, 2, 3))          # (2,)
    mins = jnp.min(stats[:, 2:4], axis=(0, 2, 3))          # (2,)
    maxs = jnp.max(stats[:, 4:6], axis=(0, 2, 3))          # (2,)
    centroid = sums / jnp.float32(n)
    max_abs = jnp.maximum(jnp.max(maxs - centroid), jnp.max(centroid - mins))
    inv = 1.0 / max_abs   # matches PyTorch: no guard for all-zero output
    norm = jnp.concatenate([centroid, jnp.reshape(inv, (1,))]).astype(jnp.float32)

    # ---- pass 2: stream tiles, write (y - c) * inv channel-major ----
    out = pl.pallas_call(
        _pass2_kernel,
        out_shape=jax.ShapeDtypeStruct((2, padded_rows, LANES), jnp.float32),
        grid=(num_tiles,),
        in_specs=[
            smem_spec,                                                    # norm
            pl.BlockSpec((tile_rows, LANES), lambda i: (i, 0)),           # t
        ] + param_specs,
        out_specs=pl.BlockSpec((2, tile_rows, LANES), lambda i: (0, i, 0)),
        compiler_params=pltpu.CompilerParams(
            dimension_semantics=("parallel",)),
    )(norm, t2d, w_flat, b_flat, alphas_f, wf_flat, bf_flat)

    # (2, rows, 128) lane-dense -> (N, 2) row-major (cheap wrapper plumbing).
    return out.reshape(2, padded)[:, :n].T


def reference_forward(t, Ws, bs, alphas, Wf, bf):
    """Pure-JAX reference matching the PyTorch forward (unfolded weights)."""
    X = jnp.concatenate(
        [jnp.cos(2.0 * jnp.pi * t), jnp.sin(2.0 * jnp.pi * t)], axis=1
    )
    for i in range(LAYER_COUNT):
        X = X @ Ws[i].T + bs[i]
        residual = X
        X = jnp.tanh(X)
        if SKIP_CONNECTIONS:
            alpha_sq = alphas[i] ** 2
            X = (X + alpha_sq * residual) / 2.0
    X = X @ Wf.T + bf
    X = X - jnp.mean(X, axis=0)
    X = X / jnp.max(jnp.abs(X))
    return X


def init_params(key):
    """Deterministic init matching nn.Linear(2,2) defaults: U(-k, k), k=1/sqrt(2)."""
    k = 1.0 / math.sqrt(2.0)
    keys = jax.random.split(key, 2 * LAYER_COUNT + 2)
    Ws, bs = [], []
    for i in range(LAYER_COUNT):
        Ws.append(jax.random.uniform(keys[2 * i], (2, 2), jnp.float32, -k, k))
        bs.append(jax.random.uniform(keys[2 * i + 1], (2,), jnp.float32, -k, k))
    Wf = jax.random.uniform(keys[-2], (2, 2), jnp.float32, -k, k)
    bf = jax.random.uniform(keys[-1], (2,), jnp.float32, -k, k)
    alphas = jnp.ones((LAYER_COUNT,), jnp.float32)  # nn.Parameter(torch.tensor(1.0))
    return Ws, bs, alphas, Wf, bf


if __name__ == "__main__":
    key = jax.random.PRNGKey(0)
    k_t, k_p = jax.random.split(key)

    Ws, bs, alphas, Wf, bf = init_params(k_p)

    # Test 1: small, not-128-aligned point count (single tile, masked tail).
    N1 = 200
    t1 = jax.random.uniform(k_t, (N1, 1), jnp.float32)
    out1 = jax.block_until_ready(nignet_forward(t1, Ws, bs, alphas, Wf, bf))
    ref1 = reference_forward(t1, Ws, bs, alphas, Wf, bf)
    assert out1.shape == (N1, 2)
    assert jnp.allclose(out1, ref1, atol=2e-5, rtol=2e-5), (
        f"max err {jnp.max(jnp.abs(out1 - ref1))}"
    )

    # Test 2: force small tiles to exercise the multi-tile / multi-chunk grid
    # (2 chunks x 1 tile in pass 1, 2 parallel tiles in pass 2, masked tail).
    N2 = 2000
    t2 = jax.random.uniform(k_t, (N2, 1), jnp.float32)
    out2 = jax.block_until_ready(
        nignet_forward(t2, Ws, bs, alphas, Wf, bf, max_tile_rows=8)
    )
    ref2 = reference_forward(t2, Ws, bs, alphas, Wf, bf)
    assert out2.shape == (N2, 2)
    assert jnp.allclose(out2, ref2, atol=2e-5, rtol=2e-5), (
        f"max err {jnp.max(jnp.abs(out2 - ref2))}"
    )

    print("KERNEL_OK")
</pallas_src>

<mosaic_0001>
module attributes {stable_mosaic.version = 11 : i64} {
  func.func @_pass1_kernel(%arg0: i32, %arg1: i32, %arg2: memref<1xi32, #tpu.memory_space<smem>>, %arg3: memref<8x128xf32, #tpu.memory_space<vmem>>, %arg4: memref<12xf32, #tpu.memory_space<smem>>, %arg5: memref<6xf32, #tpu.memory_space<smem>>, %arg6: memref<3xf32, #tpu.memory_space<smem>>, %arg7: memref<4xf32, #tpu.memory_space<smem>>, %arg8: memref<2xf32, #tpu.memory_space<smem>>, %arg9: memref<1x6x8x128xf32, #tpu.memory_space<vmem>>) attributes {dimension_semantics = [#tpu.dimension_semantics<parallel>, #tpu.dimension_semantics<arbitrary>], iteration_bounds = array<i64: 1, 1>, scalar_prefetch = 0 : i64, scratch_operands = 0 : i64, tpu.core_type = #tpu.core_type<tc>, window_params = [{transform_indices = @transform_0, window_bounds = array<i64: 1>}, {transform_indices = @transform_1, window_bounds = array<i64: 8, 128>}, {transform_indices = @transform_2, window_bounds = array<i64: 12>}, {transform_indices = @transform_3, window_bounds = array<i64: 6>}, {transform_indices = @transform_4, window_bounds = array<i64: 3>}, {transform_indices = @transform_5, window_bounds = array<i64: 4>}, {transform_indices = @transform_6, window_bounds = array<i64: 2>}, {transform_indices = @transform_7, window_bounds = array<i64: 1, 6, 8, 128>}]} {
    %c0_i32 = arith.constant 0 : i32
    %0 = arith.cmpi eq, %arg1, %c0_i32 : i32
    %1 = arith.extui %0 : i1 to i32
    %c0_i32_0 = arith.constant 0 : i32
    %2 = arith.cmpi ne, %1, %c0_i32_0 : i32
    scf.if %2 {
      %cst = arith.constant 0.000000e+00 : f32
      %11 = vector.broadcast %cst : f32 to vector<8x128xf32>
      %cst_3 = arith.constant 0x7F800000 : f32
      %12 = vector.broadcast %cst_3 : f32 to vector<8x128xf32>
      %c0_4 = arith.constant 0 : index
      %c0_5 = arith.constant 0 : index
      %c0_6 = arith.constant 0 : index
      %c0_7 = arith.constant 0 : index
      %13 = vector.load %arg9[%c0_4, %c0_5, %c0_6, %c0_7] : memref<1x6x8x128xf32, #tpu.memory_space<vmem>>, vector<1x1x8x128xf32>
      %14 = vector.shape_cast %13 : vector<1x1x8x128xf32> to vector<8x128xf32>
      %15 = vector.shape_cast %11 : vector<8x128xf32> to vector<1x1x8x128xf32>
      tpu.vector_store %arg9[%c0_4, %c0_5, %c0_6, %c0_7], %15 {strides = array<i32>} : memref<1x6x8x128xf32, #tpu.memory_space<vmem>>, vector<1x1x8x128xf32>,
      %c0_8 = arith.constant 0 : index
      %c1 = arith.constant 1 : index
      %c0_9 = arith.constant 0 : index
      %c0_10 = arith.constant 0 : index
      %16 = vector.load %arg9[%c0_8, %c1, %c0_9, %c0_10] : memref<1x6x8x128xf32, #tpu.memory_space<vmem>>, vector<1x1x8x128xf32>
      %17 = vector.shape_cast %16 : vector<1x1x8x128xf32> to vector<8x128xf32>
      %18 = vector.shape_cast %11 : vector<8x128xf32> to vector<1x1x8x128xf32>
      tpu.vector_store %arg9[%c0_8, %c1, %c0_9, %c0_10], %18 {strides = array<i32>} : memref<1x6x8x128xf32, #tpu.memory_space<vmem>>, vector<1x1x8x128xf32>,
      %c0_11 = arith.constant 0 : index
      %c2 = arith.constant 2 : index
      %c0_12 = arith.constant 0 : index
      %c0_13 = arith.constant 0 : index
      %19 = vector.load %arg9[%c0_11, %c2, %c0_12, %c0_13] : memref<1x6x8x128xf32, #tpu.memory_space<vmem>>, vector<1x1x8x128xf32>
      %20 = vector.shape_cast %19 : vector<1x1x8x128xf32> to vector<8x128xf32>
      %21 = vector.shape_cast %12 : vector<8x128xf32> to vector<1x1x8x128xf32>
      tpu.vector_store %arg9[%c0_11, %c2, %c0_12, %c0_13], %21 {strides = array<i32>} : memref<1x6x8x128xf32, #tpu.memory_space<vmem>>, vector<1x1x8x128xf32>,
      %c0_14 = arith.constant 0 : index
      %c3 = arith.constant 3 : index
      %c0_15 = arith.constant 0 : index
      %c0_16 = arith.constant 0 : index
      %22 = vector.load %arg9[%c0_14, %c3, %c0_15, %c0_16] : memref<1x6x8x128xf32, #tpu.memory_space<vmem>>, vector<1x1x8x128xf32>
      %23 = vector.shape_cast %22 : vector<1x1x8x128xf32> to vector<8x128xf32>
      %24 = vector.shape_cast %12 : vector<8x128xf32> to vector<1x1x8x128xf32>
      tpu.vector_store %arg9[%c0_14, %c3, %c0_15, %c0_16], %24 {strides = array<i32>} : memref<1x6x8x128xf32, #tpu.memory_space<vmem>>, vector<1x1x8x128xf32>,
      %cst_17 = arith.constant 0.000000e+00 : f32
      %25 = vector.broadcast %cst_17 : f32 to vector<8x128xf32>
      %26 = arith.subf %25, %12 : vector<8x128xf32>
      %c0_18 = arith.constant 0 : index
      %c4 = arith.constant 4 : index
      %c0_19 = arith.constant 0 : index
      %c0_20 = arith.constant 0 : index
      %27 = vector.load %arg9[%c0_18, %c4, %c0_19, %c0_20] : memref<1x6x8x128xf32, #tpu.memory_space<vmem>>, vector<1x1x8x128xf32>
      %28 = vector.shape_cast %27 : vector<1x1x8x128xf32> to vector<8x128xf32>
      %29 = vector.shape_cast %26 : vector<8x128xf32> to vector<1x1x8x128xf32>
      tpu.vector_store %arg9[%c0_18, %c4, %c0_19, %c0_20], %29 {strides = array<i32>} : memref<1x6x8x128xf32, #tpu.memory_space<vmem>>, vector<1x1x8x128xf32>,
      %cst_21 = arith.constant 0.000000e+00 : f32
      %30 = vector.broadcast %cst_21 : f32 to vector<8x128xf32>
      %31 = arith.subf %30, %12 : vector<8x128xf32>
      %c0_22 = arith.constant 0 : index
      %c5 = arith.constant 5 : index
      %c0_23 = arith.constant 0 : index
      %c0_24 = arith.constant 0 : index
      %32 = vector.load %arg9[%c0_22, %c5, %c0_23, %c0_24] : memref<1x6x8x128xf32, #tpu.memory_space<vmem>>, vector<1x1x8x128xf32>
      %33 = vector.shape_cast %32 : vector<1x1x8x128xf32> to vector<8x128xf32>
      %34 = vector.shape_cast %31 : vector<8x128xf32> to vector<1x1x8x128xf32>
      tpu.vector_store %arg9[%c0_22, %c5, %c0_23, %c0_24], %34 {strides = array<i32>} : memref<1x6x8x128xf32, #tpu.memory_space<vmem>>, vector<1x1x8x128xf32>,
    } else {
    }
    %c0 = arith.constant 0 : index
    %3 = memref.load %arg2[%c0] : memref<1xi32, #tpu.memory_space<smem>>
    %c1_i32 = arith.constant 1 : i32
    %4 = arith.muli %arg0, %c1_i32 : i32
    %5 = arith.addi %4, %arg1 : i32
    %c1024_i32 = arith.constant 1024 : i32
    %6 = arith.muli %5, %c1024_i32 : i32
    %7 = arith.subi %3, %6 : i32
    %c0_i32_1 = arith.constant 0 : i32
    %8 = arith.cmpi sgt, %7, %c0_i32_1 : i32
    %9 = arith.extui %8 : i1 to i32
    %c0_i32_2 = arith.constant 0 : i32
    %10 = arith.cmpi ne, %9, %c0_i32_2 : i32
    scf.if %10 {
      %c0_3 = arith.constant 0 : index
      %c0_4 = arith.constant 0 : index
      %11 = vector.load %arg3[%c0_3, %c0_4] : memref<8x128xf32, #tpu.memory_space<vmem>>, vector<8x128xf32>
      %cst = arith.constant 6.28318548 : f32
      %12 = vector.broadcast %cst : f32 to vector<8x128xf32>
      %13 = arith.mulf %12, %11 : vector<8x128xf32>
      %14 = math.cos %13 : vector<8x128xf32>
      %cst_5 = arith.constant 6.28318548 : f32
      %15 = vector.broadcast %cst_5 : f32 to vector<8x128xf32>
      %16 = arith.mulf %15, %11 : vector<8x128xf32>
      %17 = math.sin %16 : vector<8x128xf32>
      %c0_6 = arith.constant 0 : index
      %18 = memref.load %arg4[%c0_6] : memref<12xf32, #tpu.memory_space<smem>>
      %c1 = arith.constant 1 : index
      %19 = memref.load %arg4[%c1] : memref<12xf32, #tpu.memory_space<smem>>
      %c2 = arith.constant 2 : index
      %20 = memref.load %arg4[%c2] : memref<12xf32, #tpu.memory_space<smem>>
      %c3 = arith.constant 3 : index
      %21 = memref.load %arg4[%c3] : memref<12xf32, #tpu.memory_space<smem>>
      %c0_7 = arith.constant 0 : index
      %22 = memref.load %arg5[%c0_7] : memref<6xf32, #tpu.memory_space<smem>>
      %c1_8 = arith.constant 1 : index
      %23 = memref.load %arg5[%c1_8] : memref<6xf32, #tpu.memory_space<smem>>
      %24 = vector.broadcast %18 : f32 to vector<8x128xf32>
      %25 = arith.mulf %24, %14 : vector<8x128xf32>
      %26 = vector.broadcast %19 : f32 to vector<8x128xf32>
      %27 = arith.mulf %26, %17 : vector<8x128xf32>
      %28 = arith.addf %25, %27 : vector<8x128xf32>
      %29 = vector.broadcast %22 : f32 to vector<8x128xf32>
      %30 = arith.addf %28, %29 : vector<8x128xf32>
      %31 = vector.broadcast %20 : f32 to vector<8x128xf32>
      %32 = arith.mulf %31, %14 : vector<8x128xf32>
      %33 = vector.broadcast %21 : f32 to vector<8x128xf32>
      %34 = arith.mulf %33, %17 : vector<8x128xf32>
      %35 = arith.addf %32, %34 : vector<8x128xf32>
      %36 = vector.broadcast %23 : f32 to vector<8x128xf32>
      %37 = arith.addf %35, %36 : vector<8x128xf32>
      %38 = math.tanh %30 : vector<8x128xf32>
      %39 = math.tanh %37 : vector<8x128xf32>
      %c0_9 = arith.constant 0 : index
      %40 = memref.load %arg6[%c0_9] : memref<3xf32, #tpu.memory_space<smem>>
      %c0_10 = arith.constant 0 : index
      %41 = memref.load %arg6[%c0_10] : memref<3xf32, #tpu.memory_space<smem>>
      %42 = arith.mulf %40, %41 : f32
      %43 = vector.broadcast %42 : f32 to vector<8x128xf32>
      %44 = arith.mulf %43, %30 : vector<8x128xf32>
      %45 = arith.addf %38, %44 : vector<8x128xf32>
      %46 = vector.broadcast %42 : f32 to vector<8x128xf32>
      %47 = arith.mulf %46, %37 : vector<8x128xf32>
      %48 = arith.addf %39, %47 : vector<8x128xf32>
      %c4 = arith.constant 4 : index
      %49 = memref.load %arg4[%c4] : memref<12xf32, #tpu.memory_space<smem>>
      %c5 = arith.constant 5 : index
      %50 = memref.load %arg4[%c5] : memref<12xf32, #tpu.memory_space<smem>>
      %c6 = arith.constant 6 : index
      %51 = memref.load %arg4[%c6] : memref<12xf32, #tpu.memory_space<smem>>
      %c7 = arith.constant 7 : index
      %52 = memref.load %arg4[%c7] : memref<12xf32, #tpu.memory_space<smem>>
      %c2_11 = arith.constant 2 : index
      %53 = memref.load %arg5[%c2_11] : memref<6xf32, #tpu.memory_space<smem>>
      %c3_12 = arith.constant 3 : index
      %54 = memref.load %arg5[%c3_12] : memref<6xf32, #tpu.memory_space<smem>>
      %55 = vector.broadcast %49 : f32 to vector<8x128xf32>
      %56 = arith.mulf %55, %45 : vector<8x128xf32>
      %57 = vector.broadcast %50 : f32 to vector<8x128xf32>
      %58 = arith.mulf %57, %48 : vector<8x128xf32>
      %59 = arith.addf %56, %58 : vector<8x128xf32>
      %60 = vector.broadcast %53 : f32 to vector<8x128xf32>
      %61 = arith.addf %59, %60 : vector<8x128xf32>
      %62 = vector.broadcast %51 : f32 to vector<8x128xf32>
      %63 = arith.mulf %62, %45 : vector<8x128xf32>
      %64 = vector.broadcast %52 : f32 to vector<8x128xf32>
      %65 = arith.mulf %64, %48 : vector<8x128xf32>
      %66 = arith.addf %63, %65 : vector<8x128xf32>
      %67 = vector.broadcast %54 : f32 to vector<8x128xf32>
      %68 = arith.addf %66, %67 : vector<8x128xf32>
      %69 = math.tanh %61 : vector<8x128xf32>
      %70 = math.tanh %68 : vector<8x128xf32>
      %c1_13 = arith.constant 1 : index
      %71 = memref.load %arg6[%c1_13] : memref<3xf32, #tpu.memory_space<smem>>
      %c1_14 = arith.constant 1 : index
      %72 = memref.load %arg6[%c1_14] : memref<3xf32, #tpu.memory_space<smem>>
      %73 = arith.mulf %71, %72 : f32
      %74 = vector.broadcast %73 : f32 to vector<8x128xf32>
      %75 = arith.mulf %74, %61 : vector<8x128xf32>
      %76 = arith.addf %69, %75 : vector<8x128xf32>
      %77 = vector.broadcast %73 : f32 to vector<8x128xf32>
      %78 = arith.mulf %77, %68 : vector<8x128xf32>
      %79 = arith.addf %70, %78 : vector<8x128xf32>
      %c8 = arith.constant 8 : index
      %80 = memref.load %arg4[%c8] : memref<12xf32, #tpu.memory_space<smem>>
      %c9 = arith.constant 9 : index
      %81 = memref.load %arg4[%c9] : memref<12xf32, #tpu.memory_space<smem>>
      %c10 = arith.constant 10 : index
      %82 = memref.load %arg4[%c10] : memref<12xf32, #tpu.memory_space<smem>>
      %c11 = arith.constant 11 : index
      %83 = memref.load %arg4[%c11] : memref<12xf32, #tpu.memory_space<smem>>
      %c4_15 = arith.constant 4 : index
      %84 = memref.load %arg5[%c4_15] : memref<6xf32, #tpu.memory_space<smem>>
      %c5_16 = arith.constant 5 : index
      %85 = memref.load %arg5[%c5_16] : memref<6xf32, #tpu.memory_space<smem>>
      %86 = vector.broadcast %80 : f32 to vector<8x128xf32>
      %87 = arith.mulf %86, %76 : vector<8x128xf32>
      %88 = vector.broadcast %81 : f32 to vector<8x128xf32>
      %89 = arith.mulf %88, %79 : vector<8x128xf32>
      %90 = arith.addf %87, %89 : vector<8x128xf32>
      %91 = vector.broadcast %84 : f32 to vector<8x128xf32>
      %92 = arith.addf %90, %91 : vector<8x128xf32>
      %93 = vector.broadcast %82 : f32 to vector<8x128xf32>
      %94 = arith.mulf %93, %76 : vector<8x128xf32>
      %95 = vector.broadcast %83 : f32 to vector<8x128xf32>
      %96 = arith.mulf %95, %79 : vector<8x128xf32>
      %97 = arith.addf %94, %96 : vector<8x128xf32>
      %98 = vector.broadcast %85 : f32 to vector<8x128xf32>
      %99 = arith.addf %97, %98 : vector<8x128xf32>
      %100 = math.tanh %92 : vector<8x128xf32>
      %101 = math.tanh %99 : vector<8x128xf32>
      %c2_17 = arith.constant 2 : index
      %102 = memref.load %arg6[%c2_17] : memref<3xf32, #tpu.memory_space<smem>>
      %c2_18 = arith.constant 2 : index
      %103 = memref.load %arg6[%c2_18] : memref<3xf32, #tpu.memory_space<smem>>
      %104 = arith.mulf %102, %103 : f32
      %105 = vector.broadcast %104 : f32 to vector<8x128xf32>
      %106 = arith.mulf %105, %92 : vector<8x128xf32>
      %107 = arith.addf %100, %106 : vector<8x128xf32>
      %108 = vector.broadcast %104 : f32 to vector<8x128xf32>
      %109 = arith.mulf %108, %99 : vector<8x128xf32>
      %110 = arith.addf %101, %109 : vector<8x128xf32>
      %c0_19 = arith.constant 0 : index
      %111 = memref.load %arg7[%c0_19] : memref<4xf32, #tpu.memory_space<smem>>
      %112 = vector.broadcast %111 : f32 to vector<8x128xf32>
      %113 = arith.mulf %112, %107 : vector<8x128xf32>
      %c1_20 = arith.constant 1 : index
      %114 = memref.load %arg7[%c1_20] : memref<4xf32, #tpu.memory_space<smem>>
      %115 = vector.broadcast %114 : f32 to vector<8x128xf32>
      %116 = arith.mulf %115, %110 : vector<8x128xf32>
      %117 = arith.addf %113, %116 : vector<8x128xf32>
      %c0_21 = arith.constant 0 : index
      %118 = memref.load %arg8[%c0_21] : memref<2xf32, #tpu.memory_space<smem>>
      %119 = vector.broadcast %118 : f32 to vector<8x128xf32>
      %120 = arith.addf %117, %119 : vector<8x128xf32>
      %c2_22 = arith.constant 2 : index
      %121 = memref.load %arg7[%c2_22] : memref<4xf32, #tpu.memory_space<smem>>
      %122 = vector.broadcast %121 : f32 to vector<8x128xf32>
      %123 = arith.mulf %122, %107 : vector<8x128xf32>
      %c3_23 = arith.constant 3 : index
      %124 = memref.load %arg7[%c3_23] : memref<4xf32, #tpu.memory_space<smem>>
      %125 = vector.broadcast %124 : f32 to vector<8x128xf32>
      %126 = arith.mulf %125, %110 : vector<8x128xf32>
      %127 = arith.addf %123, %126 : vector<8x128xf32>
      %c1_24 = arith.constant 1 : index
      %128 = memref.load %arg8[%c1_24] : memref<2xf32, #tpu.memory_space<smem>>
      %129 = vector.broadcast %128 : f32 to vector<8x128xf32>
      %130 = arith.addf %127, %129 : vector<8x128xf32>
      %c1024_i32_25 = arith.constant 1024 : i32
      %131 = arith.cmpi sge, %7, %c1024_i32_25 : i32
      %132 = arith.extui %131 : i1 to i32
      %c0_i32_26 = arith.constant 0 : i32
      %133 = arith.cmpi ne, %132, %c0_i32_26 : i32
      scf.if %133 {
        %c0_29 = arith.constant 0 : index
        %c0_30 = arith.constant 0 : index
        %c0_31 = arith.constant 0 : index
        %c0_32 = arith.constant 0 : index
        %137 = vector.load %arg9[%c0_29, %c0_30, %c0_31, %c0_32] : memref<1x6x8x128xf32, #tpu.memory_space<vmem>>, vector<1x1x8x128xf32>
        %138 = vector.shape_cast %137 : vector<1x1x8x128xf32> to vector<8x128xf32>
        %139 = vector.shape_cast %120 : vector<8x128xf32> to vector<1x8x128xf32>
        %cst_33 = arith.constant dense<0.000000e+00> : vector<8x128xf32>
        %140 = vector.multi_reduction <add>, %139, %cst_33 [0] : vector<1x8x128xf32> to vector<8x128xf32>
        %141 = arith.addf %138, %140 : vector<8x128xf32>
        %c0_34 = arith.constant 0 : index
        %c0_35 = arith.constant 0 : index
        %c0_36 = arith.constant 0 : index
        %c0_37 = arith.constant 0 : index
        %142 = vector.load %arg9[%c0_34, %c0_35, %c0_36, %c0_37] : memref<1x6x8x128xf32, #tpu.memory_space<vmem>>, vector<1x1x8x128xf32>
        %143 = vector.shape_cast %142 : vector<1x1x8x128xf32> to vector<8x128xf32>
        %144 = vector.shape_cast %141 : vector<8x128xf32> to vector<1x1x8x128xf32>
        tpu.vector_store %arg9[%c0_34, %c0_35, %c0_36, %c0_37], %144 {strides = array<i32>} : memref<1x6x8x128xf32, #tpu.memory_space<vmem>>, vector<1x1x8x128xf32>,
        %c0_38 = arith.constant 0 : index
        %c1_39 = arith.constant 1 : index
        %c0_40 = arith.constant 0 : index
        %c0_41 = arith.constant 0 : index
        %145 = vector.load %arg9[%c0_38, %c1_39, %c0_40, %c0_41] : memref<1x6x8x128xf32, #tpu.memory_space<vmem>>, vector<1x1x8x128xf32>
        %146 = vector.shape_cast %145 : vector<1x1x8x128xf32> to vector<8x128xf32>
        %147 = vector.shape_cast %130 : vector<8x128xf32> to vector<1x8x128xf32>
        %cst_42 = arith.constant dense<0.000000e+00> : vector<8x128xf32>
        %148 = vector.multi_reduction <add>, %147, %cst_42 [0] : vector<1x8x128xf32> to vector<8x128xf32>
        %149 = arith.addf %146, %148 : vector<8x128xf32>
        %c0_43 = arith.constant 0 : index
        %c1_44 = arith.constant 1 : index
        %c0_45 = arith.constant 0 : index
        %c0_46 = arith.constant 0 : index
        %150 = vector.load %arg9[%c0_43, %c1_44, %c0_45, %c0_46] : memref<1x6x8x128xf32, #tpu.memory_space<vmem>>, vector<1x1x8x128xf32>
        %151 = vector.shape_cast %150 : vector<1x1x8x128xf32> to vector<8x128xf32>
        %152 = vector.shape_cast %149 : vector<8x128xf32> to vector<1x1x8x128xf32>
        tpu.vector_store %arg9[%c0_43, %c1_44, %c0_45, %c0_46], %152 {strides = array<i32>} : memref<1x6x8x128xf32, #tpu.memory_space<vmem>>, vector<1x1x8x128xf32>,
        %c0_47 = arith.constant 0 : index
        %c2_48 = arith.constant 2 : index
        %c0_49 = arith.constant 0 : index
        %c0_50 = arith.constant 0 : index
        %153 = vector.load %arg9[%c0_47, %c2_48, %c0_49, %c0_50] : memref<1x6x8x128xf32, #tpu.memory_space<vmem>>, vector<1x1x8x128xf32>
        %154 = vector.shape_cast %153 : vector<1x1x8x128xf32> to vector<8x128xf32>
        %155 = vector.shape_cast %120 : vector<8x128xf32> to vector<1x8x128xf32>
        %cst_51 = arith.constant dense<0x7F800000> : vector<8x128xf32>
        %156 = vector.multi_reduction <minimumf>, %155, %cst_51 [0] : vector<1x8x128xf32> to vector<8x128xf32>
        %157 = arith.minimumf %154, %156 : vector<8x128xf32>
        %c0_52 = arith.constant 0 : index
        %c2_53 = arith.constant 2 : index
        %c0_54 = arith.constant 0 : index
        %c0_55 = arith.constant 0 : index
        %158 = vector.load %arg9[%c0_52, %c2_53, %c0_54, %c0_55] : memref<1x6x8x128xf32, #tpu.memory_space<vmem>>, vector<1x1x8x128xf32>
        %159 = vector.shape_cast %158 : vector<1x1x8x128xf32> to vector<8x128xf32>
        %160 = vector.shape_cast %157 : vector<8x128xf32> to vector<1x1x8x128xf32>
        tpu.vector_store %arg9[%c0_52, %c2_53, %c0_54, %c0_55], %160 {strides = array<i32>} : memref<1x6x8x128xf32, #tpu.memory_space<vmem>>, vector<1x1x8x128xf32>,
        %c0_56 = arith.constant 0 : index
        %c3_57 = arith.constant 3 : index
        %c0_58 = arith.constant 0 : index
        %c0_59 = arith.constant 0 : index
        %161 = vector.load %arg9[%c0_56, %c3_57, %c0_58, %c0_59] : memref<1x6x8x128xf32, #tpu.memory_space<vmem>>, vector<1x1x8x128xf32>
        %162 = vector.shape_cast %161 : vector<1x1x8x128xf32> to vector<8x128xf32>
        %163 = vector.shape_cast %130 : vector<8x128xf32> to vector<1x8x128xf32>
        %cst_60 = arith.constant dense<0x7F800000> : vector<8x128xf32>
        %164 = vector.multi_reduction <minimumf>, %163, %cst_60 [0] : vector<1x8x128xf32> to vector<8x128xf32>
        %165 = arith.minimumf %162, %164 : vector<8x128xf32>
        %c0_61 = arith.constant 0 : index
        %c3_62 = arith.constant 3 : index
        %c0_63 = arith.constant 0 : index
        %c0_64 = arith.constant 0 : index
        %166 = vector.load %arg9[%c0_61, %c3_62, %c0_63, %c0_64] : memref<1x6x8x128xf32, #tpu.memory_space<vmem>>, vector<1x1x8x128xf32>
        %167 = vector.shape_cast %166 : vector<1x1x8x128xf32> to vector<8x128xf32>
        %168 = vector.shape_cast %165 : vector<8x128xf32> to vector<1x1x8x128xf32>
        tpu.vector_store %arg9[%c0_61, %c3_62, %c0_63, %c0_64], %168 {strides = array<i32>} : memref<1x6x8x128xf32, #tpu.memory_space<vmem>>, vector<1x1x8x128xf32>,
        %c0_65 = arith.constant 0 : index
        %c4_66 = arith.constant 4 : index
        %c0_67 = arith.constant 0 : index
        %c0_68 = arith.constant 0 : index
        %169 = vector.load %arg9[%c0_65, %c4_66, %c0_67, %c0_68] : memref<1x6x8x128xf32, #tpu.memory_space<vmem>>, vector<1x1x8x128xf32>
        %170 = vector.shape_cast %169 : vector<1x1x8x128xf32> to vector<8x128xf32>
        %171 = vector.shape_cast %120 : vector<8x128xf32> to vector<1x8x128xf32>
        %cst_69 = arith.constant dense<0xFF800000> : vector<8x128xf32>
        %172 = vector.multi_reduction <maximumf>, %171, %cst_69 [0] : vector<1x8x128xf32> to vector<8x128xf32>
        %173 = arith.maximumf %170, %172 : vector<8x128xf32>
        %c0_70 = arith.constant 0 : index
        %c4_71 = arith.constant 4 : index
        %c0_72 = arith.constant 0 : index
        %c0_73 = arith.constant 0 : index
        %174 = vector.load %arg9[%c0_70, %c4_71, %c0_72, %c0_73] : memref<1x6x8x128xf32, #tpu.memory_space<vmem>>, vector<1x1x8x128xf32>
        %175 = vector.shape_cast %174 : vector<1x1x8x128xf32> to vector<8x128xf32>
        %176 = vector.shape_cast %173 : vector<8x128xf32> to vector<1x1x8x128xf32>
        tpu.vector_store %arg9[%c0_70, %c4_71, %c0_72, %c0_73], %176 {strides = array<i32>} : memref<1x6x8x128xf32, #tpu.memory_space<vmem>>, vector<1x1x8x128xf32>,
        %c0_74 = arith.constant 0 : index
        %c5_75 = arith.constant 5 : index
        %c0_76 = arith.constant 0 : index
        %c0_77 = arith.constant 0 : index
        %177 = vector.load %arg9[%c0_74, %c5_75, %c0_76, %c0_77] : memref<1x6x8x128xf32, #tpu.memory_space<vmem>>, vector<1x1x8x128xf32>
        %178 = vector.shape_cast %177 : vector<1x1x8x128xf32> to vector<8x128xf32>
        %179 = vector.shape_cast %130 : vector<8x128xf32> to vector<1x8x128xf32>
        %cst_78 = arith.constant dense<0xFF800000> : vector<8x128xf32>
        %180 = vector.multi_reduction <maximumf>, %179, %cst_78 [0] : vector<1x8x128xf32> to vector<8x128xf32>
        %181 = arith.maximumf %178, %180 : vector<8x128xf32>
        %c0_79 = arith.constant 0 : index
        %c5_80 = arith.constant 5 : index
        %c0_81 = arith.constant 0 : index
        %c0_82 = arith.constant 0 : index
        %182 = vector.load %arg9[%c0_79, %c5_80, %c0_81, %c0_82] : memref<1x6x8x128xf32, #tpu.memory_space<vmem>>, vector<1x1x8x128xf32>
        %183 = vector.shape_cast %182 : vector<1x1x8x128xf32> to vector<8x128xf32>
        %184 = vector.shape_cast %181 : vector<8x128xf32> to vector<1x1x8x128xf32>
        tpu.vector_store %arg9[%c0_79, %c5_80, %c0_81, %c0_82], %184 {strides = array<i32>} : memref<1x6x8x128xf32, #tpu.memory_space<vmem>>, vector<1x1x8x128xf32>,
      } else {
      }
      %c1024_i32_27 = arith.constant 1024 : i32
      %134 = arith.cmpi slt, %7, %c1024_i32_27 : i32
      %135 = arith.extui %134 : i1 to i32
      %c0_i32_28 = arith.constant 0 : i32
      %136 = arith.cmpi ne, %135, %c0_i32_28 : i32
      scf.if %136 {
        %137 = tpu.iota {dimensions = array<i32: 0>} : vector<8x128xi32>
        %c128_i32 = arith.constant 128 : i32
        %138 = vector.broadcast %c128_i32 : i32 to vector<8x128xi32>
        %139 = arith.muli %137, %138 : vector<8x128xi32>
        %140 = tpu.iota {dimensions = array<i32: 1>} : vector<8x128xi32>
        %141 = arith.addi %139, %140 : vector<8x128xi32>
        %142 = vector.broadcast %7 : i32 to vector<8x128xi32>
        %143 = arith.cmpi slt, %141, %142 : vector<8x128xi32>
        %cst_29 = arith.constant 0.000000e+00 : f32
        %144 = vector.broadcast %cst_29 : f32 to vector<8x128xf32>
        %145 = arith.select %143, %120, %144 : vector<8x128xi1>, vector<8x128xf32>
        %cst_30 = arith.constant 0.000000e+00 : f32
        %146 = vector.broadcast %cst_30 : f32 to vector<8x128xf32>
        %147 = arith.select %143, %130, %146 : vector<8x128xi1>, vector<8x128xf32>
        %cst_31 = arith.constant 0x7F800000 : f32
        %148 = vector.broadcast %cst_31 : f32 to vector<8x128xf32>
        %149 = arith.select %143, %120, %148 : vector<8x128xi1>, vector<8x128xf32>
        %cst_32 = arith.constant 0x7F800000 : f32
        %150 = vector.broadcast %cst_32 : f32 to vector<8x128xf32>
        %151 = arith.select %143, %130, %150 : vector<8x128xi1>, vector<8x128xf32>
        %cst_33 = arith.constant 0.000000e+00 : f32
        %cst_34 = arith.constant 0x7F800000 : f32
        %152 = arith.subf %cst_33, %cst_34 : f32
        %153 = vector.broadcast %152 : f32 to vector<8x128xf32>
        %154 = arith.select %143, %120, %153 : vector<8x128xi1>, vector<8x128xf32>
        %cst_35 = arith.constant 0.000000e+00 : f32
        %cst_36 = arith.constant 0x7F800000 : f32
        %155 = arith.subf %cst_35, %cst_36 : f32
        %156 = vector.broadcast %155 : f32 to vector<8x128xf32>
        %157 = arith.select %143, %130, %156 : vector<8x128xi1>, vector<8x128xf32>
        %c0_37 = arith.constant 0 : index
        %c0_38 = arith.constant 0 : index
        %c0_39 = arith.constant 0 : index
        %c0_40 = arith.constant 0 : index
        %158 = vector.load %arg9[%c0_37, %c0_38, %c0_39, %c0_40] : memref<1x6x8x128xf32, #tpu.memory_space<vmem>>, vector<1x1x8x128xf32>
        %159 = vector.shape_cast %158 : vector<1x1x8x128xf32> to vector<8x128xf32>
        %160 = vector.shape_cast %145 : vector<8x128xf32> to vector<1x8x128xf32>
        %cst_41 = arith.constant dense<0.000000e+00> : vector<8x128xf32>
        %161 = vector.multi_reduction <add>, %160, %cst_41 [0] : vector<1x8x128xf32> to vector<8x128xf32>
        %162 = arith.addf %159, %161 : vector<8x128xf32>
        %c0_42 = arith.constant 0 : index
        %c0_43 = arith.constant 0 : index
        %c0_44 = arith.constant 0 : index
        %c0_45 = arith.constant 0 : index
        %163 = vector.load %arg9[%c0_42, %c0_43, %c0_44, %c0_45] : memref<1x6x8x128xf32, #tpu.memory_space<vmem>>, vector<1x1x8x128xf32>
        %164 = vector.shape_cast %163 : vector<1x1x8x128xf32> to vector<8x128xf32>
        %165 = vector.shape_cast %162 : vector<8x128xf32> to vector<1x1x8x128xf32>
        tpu.vector_store %arg9[%c0_42, %c0_43, %c0_44, %c0_45], %165 {strides = array<i32>} : memref<1x6x8x128xf32, #tpu.memory_space<vmem>>, vector<1x1x8x128xf32>,
        %c0_46 = arith.constant 0 : index
        %c1_47 = arith.constant 1 : index
        %c0_48 = arith.constant 0 : index
        %c0_49 = arith.constant 0 : index
        %166 = vector.load %arg9[%c0_46, %c1_47, %c0_48, %c0_49] : memref<1x6x8x128xf32, #tpu.memory_space<vmem>>, vector<1x1x8x128xf32>
        %167 = vector.shape_cast %166 : vector<1x1x8x128xf32> to vector<8x128xf32>
        %168 = vector.shape_cast %147 : vector<8x128xf32> to vector<1x8x128xf32>
        %cst_50 = arith.constant dense<0.000000e+00> : vector<8x128xf32>
        %169 = vector.multi_reduction <add>, %168, %cst_50 [0] : vector<1x8x128xf32> to vector<8x128xf32>
        %170 = arith.addf %167, %169 : vector<8x128xf32>
        %c0_51 = arith.constant 0 : index
        %c1_52 = arith.constant 1 : index
        %c0_53 = arith.constant 0 : index
        %c0_54 = arith.constant 0 : index
        %171 = vector.load %arg9[%c0_51, %c1_52, %c0_53, %c0_54] : memref<1x6x8x128xf32, #tpu.memory_space<vmem>>, vector<1x1x8x128xf32>
        %172 = vector.shape_cast %171 : vector<1x1x8x128xf32> to vector<8x128xf32>
        %173 = vector.shape_cast %170 : vector<8x128xf32> to vector<1x1x8x128xf32>
        tpu.vector_store %arg9[%c0_51, %c1_52, %c0_53, %c0_54], %173 {strides = array<i32>} : memref<1x6x8x128xf32, #tpu.memory_space<vmem>>, vector<1x1x8x128xf32>,
        %c0_55 = arith.constant 0 : index
        %c2_56 = arith.constant 2 : index
        %c0_57 = arith.constant 0 : index
        %c0_58 = arith.constant 0 : index
        %174 = vector.load %arg9[%c0_55, %c2_56, %c0_57, %c0_58] : memref<1x6x8x128xf32, #tpu.memory_space<vmem>>, vector<1x1x8x128xf32>
        %175 = vector.shape_cast %174 : vector<1x1x8x128xf32> to vector<8x128xf32>
        %176 = vector.shape_cast %149 : vector<8x128xf32> to vector<1x8x128xf32>
        %cst_59 = arith.constant dense<0x7F800000> : vector<8x128xf32>
        %177 = vector.multi_reduction <minimumf>, %176, %cst_59 [0] : vector<1x8x128xf32> to vector<8x128xf32>
        %178 = arith.minimumf %175, %177 : vector<8x128xf32>
        %c0_60 = arith.constant 0 : index
        %c2_61 = arith.constant 2 : index
        %c0_62 = arith.constant 0 : index
        %c0_63 = arith.constant 0 : index
        %179 = vector.load %arg9[%c0_60, %c2_61, %c0_62, %c0_63] : memref<1x6x8x128xf32, #tpu.memory_space<vmem>>, vector<1x1x8x128xf32>
        %180 = vector.shape_cast %179 : vector<1x1x8x128xf32> to vector<8x128xf32>
        %181 = vector.shape_cast %178 : vector<8x128xf32> to vector<1x1x8x128xf32>
        tpu.vector_store %arg9[%c0_60, %c2_61, %c0_62, %c0_63], %181 {strides = array<i32>} : memref<1x6x8x128xf32, #tpu.memory_space<vmem>>, vector<1x1x8x128xf32>,
        %c0_64 = arith.constant 0 : index
        %c3_65 = arith.constant 3 : index
        %c0_66 = arith.constant 0 : index
        %c0_67 = arith.constant 0 : index
        %182 = vector.load %arg9[%c0_64, %c3_65, %c0_66, %c0_67] : memref<1x6x8x128xf32, #tpu.memory_space<vmem>>, vector<1x1x8x128xf32>
        %183 = vector.shape_cast %182 : vector<1x1x8x128xf32> to vector<8x128xf32>
        %184 = vector.shape_cast %151 : vector<8x128xf32> to vector<1x8x128xf32>
        %cst_68 = arith.constant dense<0x7F800000> : vector<8x128xf32>
        %185 = vector.multi_reduction <minimumf>, %184, %cst_68 [0] : vector<1x8x128xf32> to vector<8x128xf32>
        %186 = arith.minimumf %183, %185 : vector<8x128xf32>
        %c0_69 = arith.constant 0 : index
        %c3_70 = arith.constant 3 : index
        %c0_71 = arith.constant 0 : index
        %c0_72 = arith.constant 0 : index
        %187 = vector.load %arg9[%c0_69, %c3_70, %c0_71, %c0_72] : memref<1x6x8x128xf32, #tpu.memory_space<vmem>>, vector<1x1x8x128xf32>
        %188 = vector.shape_cast %187 : vector<1x1x8x128xf32> to vector<8x128xf32>
        %189 = vector.shape_cast %186 : vector<8x128xf32> to vector<1x1x8x128xf32>
        tpu.vector_store %arg9[%c0_69, %c3_70, %c0_71, %c0_72], %189 {strides = array<i32>} : memref<1x6x8x128xf32, #tpu.memory_space<vmem>>, vector<1x1x8x128xf32>,
        %c0_73 = arith.constant 0 : index
        %c4_74 = arith.constant 4 : index
        %c0_75 = arith.constant 0 : index
        %c0_76 = arith.constant 0 : index
        %190 = vector.load %arg9[%c0_73, %c4_74, %c0_75, %c0_76] : memref<1x6x8x128xf32, #tpu.memory_space<vmem>>, vector<1x1x8x128xf32>
        %191 = vector.shape_cast %190 : vector<1x1x8x128xf32> to vector<8x128xf32>
        %192 = vector.shape_cast %154 : vector<8x128xf32> to vector<1x8x128xf32>
        %cst_77 = arith.constant dense<0xFF800000> : vector<8x128xf32>
        %193 = vector.multi_reduction <maximumf>, %192, %cst_77 [0] : vector<1x8x128xf32> to vector<8x128xf32>
        %194 = arith.maximumf %191, %193 : vector<8x128xf32>
        %c0_78 = arith.constant 0 : index
        %c4_79 = arith.constant 4 : index
        %c0_80 = arith.constant 0 : index
        %c0_81 = arith.constant 0 : index
        %195 = vector.load %arg9[%c0_78, %c4_79, %c0_80, %c0_81] : memref<1x6x8x128xf32, #tpu.memory_space<vmem>>, vector<1x1x8x128xf32>
        %196 = vector.shape_cast %195 : vector<1x1x8x128xf32> to vector<8x128xf32>
        %197 = vector.shape_cast %194 : vector<8x128xf32> to vector<1x1x8x128xf32>
        tpu.vector_store %arg9[%c0_78, %c4_79, %c0_80, %c0_81], %197 {strides = array<i32>} : memref<1x6x8x128xf32, #tpu.memory_space<vmem>>, vector<1x1x8x128xf32>,
        %c0_82 = arith.constant 0 : index
        %c5_83 = arith.constant 5 : index
        %c0_84 = arith.constant 0 : index
        %c0_85 = arith.constant 0 : index
        %198 = vector.load %arg9[%c0_82, %c5_83, %c0_84, %c0_85] : memref<1x6x8x128xf32, #tpu.memory_space<vmem>>, vector<1x1x8x128xf32>
        %199 = vector.shape_cast %198 : vector<1x1x8x128xf32> to vector<8x128xf32>
        %200 = vector.shape_cast %157 : vector<8x128xf32> to vector<1x8x128xf32>
        %cst_86 = arith.constant dense<0xFF800000> : vector<8x128xf32>
        %201 = vector.multi_reduction <maximumf>, %200, %cst_86 [0] : vector<1x8x128xf32> to vector<8x128xf32>
        %202 = arith.maximumf %199, %201 : vector<8x128xf32>
        %c0_87 = arith.constant 0 : index
        %c5_88 = arith.constant 5 : index
        %c0_89 = arith.constant 0 : index
        %c0_90 = arith.constant 0 : index
        %203 = vector.load %arg9[%c0_87, %c5_88, %c0_89, %c0_90] : memref<1x6x8x128xf32, #tpu.memory_space<vmem>>, vector<1x1x8x128xf32>
        %204 = vector.shape_cast %203 : vector<1x1x8x128xf32> to vector<8x128xf32>
        %205 = vector.shape_cast %202 : vector<8x128xf32> to vector<1x1x8x128xf32>
        tpu.vector_store %arg9[%c0_87, %c5_88, %c0_89, %c0_90], %205 {strides = array<i32>} : memref<1x6x8x128xf32, #tpu.memory_space<vmem>>, vector<1x1x8x128xf32>,
      } else {
      }
    } else {
    }
    return
  }
  func.func @transform_0(%arg0: i32, %arg1: i32) -> i32 {
    %c0_i32 = arith.constant 0 : i32
    %c0_i32_0 = arith.constant 0 : i32
    return %c0_i32 : i32
  }
  func.func @transform_1(%arg0: i32, %arg1: i32) -> (i32, i32) {
    %c1_i32 = arith.constant 1 : i32
    %0 = arith.muli %arg0, %c1_i32 : i32
    %1 = arith.addi %0, %arg1 : i32
    %c0_i32 = arith.constant 0 : i32
    %c0_i32_0 = arith.constant 0 : i32
    return %1, %c0_i32 : i32, i32
  }
  func.func @transform_2(%arg0: i32, %arg1: i32) -> i32 {
    %c0_i32 = arith.constant 0 : i32
    %c0_i32_0 = arith.constant 0 : i32
    return %c0_i32 : i32
  }
  func.func @transform_3(%arg0: i32, %arg1: i32) -> i32 {
    %c0_i32 = arith.constant 0 : i32
    %c0_i32_0 = arith.constant 0 : i32
    return %c0_i32 : i32
  }
  func.func @transform_4(%arg0: i32, %arg1: i32) -> i32 {
    %c0_i32 = arith.constant 0 : i32
    %c0_i32_0 = arith.constant 0 : i32
    return %c0_i32 : i32
  }
  func.func @transform_5(%arg0: i32, %arg1: i32) -> i32 {
    %c0_i32 = arith.constant 0 : i32
    %c0_i32_0 = arith.constant 0 : i32
    return %c0_i32 : i32
  }
  func.func @transform_6(%arg0: i32, %arg1: i32) -> i32 {
    %c0_i32 = arith.constant 0 : i32
    %c0_i32_0 = arith.constant 0 : i32
    return %c0_i32 : i32
  }
  func.func @transform_7(%arg0: i32, %arg1: i32) -> (i32, i32, i32, i32) {
    %c0_i32 = arith.constant 0 : i32
    %c0_i32_0 = arith.constant 0 : i32
    %c0_i32_1 = arith.constant 0 : i32
    %c0_i32_2 = arith.constant 0 : i32
    return %arg0, %c0_i32, %c0_i32_0, %c0_i32_1 : i32, i32, i32, i32
  }
}

</mosaic_0001>

<bundles_post_ra>
// kernel: tpu_custom_call.1
= control target key start
LH: loop header
LB: loop body
LE: loop exit
PB: predicated region body
PF: predicated region fallthrough
CT: control target
= control target key end

     0   :  { %13 = vsyncpa [#allocation4], 0  ;;  %s881_s0 = inlined_call_operand.<no memory space> [shape: s32[1], index: 0, kind: input, shape index: {}]   ;;  %s882_s1 = inlined_call_operand.hbm [shape: f32[8,128], index: 1, kind: input, shape index: {}]   ;;  %s883_s2 = inlined_call_operand.vmem [shape: f32[12], index: 2, kind: input, shape index: {}]   ;;  %s884_s3 = inlined_call_operand.vmem [shape: f32[6], index: 3, kind: input, shape index: {}]   ;;  %s885_s4 = inlined_call_operand.vmem [shape: f32[3], index: 4, kind: input, shape index: {}]   ;;  %s886_s5 = inlined_call_operand.vmem [shape: f32[4], index: 5, kind: input, shape index: {}]   ;;  %s887_s6 = inlined_call_operand.vmem [shape: f32[2], index: 6, kind: input, shape index: {}]   ;;  %s888_s7 = inlined_call_operand.hbm [shape: f32[1,6,8,128], index: 7, kind: output, shape index: {}]  }
   0x1   :  { %14 = vsyncpa [#allocation6], 0 }
   0x2   :  { %15 = vsyncpa [#allocation9], 0 }
   0x3   :  { %16 = vsyncpa [#allocation12], 0  ;;  %s49_s26 = sshll.u32 %s884_s3, 4  ;;  %s50_s26 = int_to_ptr.vmem [resolvable:$true] %s49_s26 }
   0x4   :  { %17 = vsyncpa [#allocation5], 0  ;;  %s69_s29 = sshll.u32 %s886_s5, 4  ;;  %s605_s30 = scalar_lea.vmem %s50_s26, 16  ;;  %s70_s29 = int_to_ptr.vmem [resolvable:$true] %s69_s29 }
   0x5   :  { %p606_p0 = scmp.ne.s32.totalorder %s50_s26, %s605_s30  ;;  %p610_p1 = scmp.lt.s32.totalorder %s50_s26, %s50_s26 }
   0x6   :  { %p611_p2 = scmp.lt.s32.totalorder %s605_s30, %s605_s30 }
   0x8   :  { %p612_p3 = por %p611_p2, %p610_p1 }
   0xa   :  { %p613_p4 = pnand %p612_p3, %p606_p0 }
   0xc   :  { %616 = shalt.err (!%p613_p4)
}
   0xd   :  { %s719_s8 = smov [#allocation8]   ;;  %s617_s9 = scalar_lea.vmem %s70_s29, 16 }
   0xe   :  { %52 = dma.vmem_to_smem %s50_s26, 16, %s719_s8, [#allocation9]  }
   0xf   :  { %p618_p5 = scmp.ne.s32.totalorder %s70_s29, %s617_s9  ;;  %p622_p6 = scmp.lt.s32.totalorder %s70_s29, %s70_s29 }
  0x10   :  { %p623_p7 = scmp.lt.s32.totalorder %s617_s9, %s617_s9 }
  0x12   :  { %p624_p8 = por %p623_p7, %p622_p6 }
  0x14   :  { %p625_p9 = pnand %p624_p8, %p618_p5 }
  0x16   :  { %628 = shalt.err (!%p625_p9)
}
  0x17   :  { %s720_s3 = smov [#allocation11]   ;;  %s39_s11 = sshll.u32 %s883_s2, 4  ;;  %s40_s11 = int_to_ptr.vmem [resolvable:$true] %s39_s11 }
  0x18   :  { %72 = dma.vmem_to_smem %s70_s29, 16, %s720_s3, [#allocation12]  }
  0x19   :  { %s721_s12 = smov [#allocation3]   ;;  %s629_s16 = scalar_lea.hbm %s882_s1, 128 }
  0x1a   :  { %s29_s13 = sshll.u32 %s721_s12, 4  ;;  %p630_p10 = scmp.ne.s32.totalorder %s882_s1, %s629_s16  ;;  %s30_s13 = int_to_ptr.vmem [resolvable:$true] %s29_s13 }
  0x1b   :  { %p633_p11 = scmp.lt.u32.totalorder %s629_s16, %s882_s1 }
  0x1d   :  { %p635_p12 = pnand %p633_p11, %p630_p10 }
  0x1f   :  { %638 = shalt.err (!%p635_p12)
}
  0x20   :  { %s639_s21 = scalar_lea.vmem %s30_s13, 128  ;;  %p644_p0 = scmp.lt.s32.totalorder %s30_s13, %s30_s13 }
  0x21   :  { %p640_p13 = scmp.ne.s32.totalorder %s30_s13, %s639_s21  ;;  %p645_p1 = scmp.lt.s32.totalorder %s639_s21, %s639_s21 }
  0x23   :  { %p646_p2 = por %p645_p1, %p644_p0 }
  0x25   :  { %p647_p3 = pnand %p646_p2, %p640_p13 }
  0x27   :  { %650 = shalt.err (!%p647_p3)
}
  0x28   :  { %32 = dma.hbm_to_vmem [thread:$0]  %s882_s1, 128, %s30_s13, [#allocation4]  }
  0x29   :  { %s651_s23 = scalar_lea.vmem %s40_s11, 16  ;;  %p656_p5 = scmp.lt.s32.totalorder %s40_s11, %s40_s11 }
  0x2a   :  { %p652_p4 = scmp.ne.s32.totalorder %s40_s11, %s651_s23  ;;  %p657_p6 = scmp.lt.s32.totalorder %s651_s23, %s651_s23 }
  0x2c   :  { %p658_p7 = por %p657_p6, %p656_p5 }
  0x2e   :  { %p659_p8 = pnand %p658_p7, %p652_p4 }
  0x30   :  { %662 = shalt.err (!%p659_p8)
}
  0x31   :  { %s722_s24 = smov [#allocation7]   ;;  %s59_s27 = sshll.u32 %s885_s4, 4  ;;  %s60_s27 = int_to_ptr.vmem [resolvable:$true] %s59_s27 }
  0x32   :  { %42 = dma.vmem_to_smem %s40_s11, 16, %s722_s24, [#allocation6]  }
  0x33   :  { %s79_s30 = sshll.u32 %s887_s6, 4  ;;  %s663_s8 = scalar_lea.vmem %s60_s27, 16  ;;  %s80_s30 = int_to_ptr.vmem [resolvable:$true] %s79_s30 }
  0x34   :  { %p664_p9 = scmp.ne.s32.totalorder %s60_s27, %s663_s8  ;;  %p668_p10 = scmp.lt.s32.totalorder %s60_s27, %s60_s27 }
  0x35   :  { %p669_p11 = scmp.lt.s32.totalorder %s663_s8, %s663_s8 }
  0x37   :  { %p670_p12 = por %p669_p11, %p668_p10 }
  0x39   :  { %p671_p13 = pnand %p670_p12, %p664_p9 }
  0x3b   :  { %674 = shalt.err (!%p671_p13)
}
  0x3c   :  { %s723_s1 = smov [#allocation10]   ;;  %s675_s9 = scalar_lea.vmem %s80_s30, 16 }
  0x3d   :  { %62 = dma.vmem_to_smem %s60_s27, 16, %s723_s1, [#allocation9]  }
  0x3e   :  { %p676_p0 = scmp.ne.s32.totalorder %s80_s30, %s675_s9  ;;  %p680_p1 = scmp.lt.s32.totalorder %s80_s30, %s80_s30 }
  0x3f   :  { %p681_p2 = scmp.lt.s32.totalorder %s675_s9, %s675_s9 }
  0x41   :  { %p682_p3 = por %p681_p2, %p680_p1 }
  0x43   :  { %p683_p4 = pnand %p682_p3, %p676_p0 }
  0x45   :  { %686 = shalt.err (!%p683_p4)
}
  0x46   :  { %s724_s4 = smov [#allocation13]  }
  0x47   :  { %82 = dma.vmem_to_smem %s80_s30, 16, %s724_s4, [#allocation12]  }
  0x48   :  { %709 = dma.done.wait [#allocation4], 128  }
  0x49   :  { %710 = vsyncadd [#allocation4], 4294967168 }
  0x4a   :  { %711 = dma.done.wait [#allocation6], 16  }
  0x4b   :  { %712 = vsyncadd [#allocation6], 4294967280 }
  0x4c   :  { %713 = dma.done.wait [#allocation9], 32  }
  0x4d   :  { %714 = vsyncadd [#allocation9], 4294967264 }
  0x4e   :  { %715 = dma.done.wait [#allocation12], 32  }
  0x4f   :  { %716 = vsyncadd [#allocation12], 4294967264 }
  0x50   :  { %101 = sfence }
  0x51   :  { %v725_v0 = vmov 0.0   ;;  %v726_v1 = vmov inf   ;;  %v727_v2 = vmov -inf   ;;  %p534_p5 = scmp.le.s32.totalorder %s881_s0, 0 }
  0x52   :  { %107 = vst [vmem:[#allocation14] sm:$0xff] %v725_v0  ;;  %109 = vst [vmem:[#allocation14 + $0x8] sm:$0xff] %v725_v0  ;;  %v126_v3 = vld [vmem:[#allocation3] sm:$0xff] (!%p534_p5)  ;;  %v728_v16 = vmov (!%p534_p5), 683565275   ;;  %s827_s5 = sld [smem:[#allocation7]] (!%p534_p5) }
  0x53   :  { %111 = vst [vmem:[#allocation14 + $0x10] sm:$0xff] %v726_v1  ;;  %113 = vst [vmem:[#allocation14 + $0x18] sm:$0xff] %v726_v1  ;;  %125 = sbr.rel (%p534_p5) target bundleno = 252 (0xfc), region = 61  ;;  %v807_v4 = vmul.f32 (!%p534_p5), 6.2831855, %v126_v3  ;;  %s829_s10 = sld [smem:[#allocation7 + $0x1]] (!%p534_p5) }
  0x54   :  { %115 = vst [vmem:[#allocation14 + $0x20] sm:$0xff] %v727_v2  ;;  %117 = vst [vmem:[#allocation14 + $0x28] sm:$0xff] %v727_v2  ;;  %v729_v18 = vmov (!%p534_p5), 2475754826   ;;  %v730_v20 = vmov (!%p534_p5), 2131351028  }
  0x55   :  { %v131_v5 = vand.u32 (!%p534_p5), 2139095040, %v807_v4  ;;  %v128_v7 = vand.u32 (!%p534_p5), 2147483647, %v807_v4  ;;  %v731_v22 = vmov (!%p534_p5), 2102212464   ;;  %vm130_vm7 = vcmp.lt.s32.totalorder (!%p534_p5), %v807_v4, 0 }
  0x56   :  { %v732_v24 = vmov (!%p534_p5), 920167782   ;;  %v733_v31 = vmov (!%p534_p5), 1326507024   ;;  %s544_s11 = sld [smem:[#allocation7 + $0x2]] (!%p534_p5)  ;;  %s545_s12 = sld [smem:[#allocation7 + $0x3]] (!%p534_p5)  ;;  %vm220_vm13 = vweird.f32 (!%p534_p5), %v807_v4 }
  0x57   :  { %v132_v6 = vshrl.u32 (!%p534_p5), %v131_v5, 23  ;;  %v135_v10 = vand.u32 (!%p534_p5), 8388607, %v128_v7  ;;  %vm129_vm8 = vcmp.le.f32.partialorder (!%p534_p5), %v128_v7, 0.7853982  ;;  %s831_s13 = sld [smem:[#allocation8]] (!%p534_p5) }
  0x58   :  { %s833_s14 = sld [smem:[#allocation8 + $0x1]] (!%p534_p5)  ;;  %s357_s15 = sld [smem:[#allocation10]] (!%p534_p5) }
  0x59   :  { %v535_v8 = vadd.s32 (!%p534_p5), 4294967169, %v132_v6  ;;  %v136_v13 = vor.u32 (!%p534_p5), 8388608, %v135_v10  ;;  %s547_s17 = sld [smem:[#allocation7 + $0x4]] (!%p534_p5)  ;;  %s549_s18 = sld [smem:[#allocation7 + $0x6]] (!%p534_p5) }
  0x5a   :  { %s548_s19 = sld [smem:[#allocation7 + $0x5]]  ;;  %s550_s20 = sld [smem:[#allocation7 + $0x7]] }
  0x5b   :  { %v138_v9 = vadd.s32 1, %v535_v8  ;;  %v176_v33 = vshll.u32 %v136_v13, 8  ;;  %s551_s21 = sld [smem:[#allocation8 + $0x2]]  ;;  %s552_s2 = sld [smem:[#allocation8 + $0x3]] }
  0x5c   :  { %s553_s22 = sld [smem:[#allocation10 + $0x1]]  ;;  %s554_s24 = sld [smem:[#allocation7 + $0x8]] }
  0x5d   :  { %vm139_vm0 = vcmp.gt.s32.totalorder %v138_v9, 0  ;;  %s556_s25 = sld [smem:[#allocation7 + $0xa]]  ;;  %s555_s26 = sld [smem:[#allocation7 + $0x9]] }
  0x5e   :  { %v140_v11 = vsel %vm139_vm0, %v138_v9, 0  ;;  %s358_s16 = smul.f32 %s357_s15, %s357_s15  ;;  %s557_s27 = sld [smem:[#allocation7 + $0xb]] }
  0x5f   :  { %v142_v12 = vand.u32 31, %v140_v11  ;;  %v141_v14 = vshrl.u32 %v140_v11, 5  ;;  %s558_s28 = sld [smem:[#allocation8 + $0x4]]  ;;  %s559_s29 = sld [smem:[#allocation8 + $0x5]] }
  0x60   :  { %s560_s30 = sld [smem:[#allocation10 + $0x2]]  ;;  %s422_s1 = sld [smem:[#allocation11]] }
  0x61   :  { %v143_v15 = vsub.s32 32, %v142_v12  ;;  %v145_v17 = vshll.u32 %v728_v16, %v142_v12  ;;  %v148_v19 = vshll.u32 %v729_v18, %v142_v12  ;;  %v151_v21 = vshll.u32 %v730_v20, %v142_v12  ;;  %s562_s9 = sld [smem:[#allocation11 + $0x2]]  ;;  %s561_s4 = sld [smem:[#allocation11 + $0x1]] }
  0x62   :  { %v154_v23 = vshll.u32 %v731_v22, %v142_v12  ;;  %v157_v25 = vshll.u32 %v732_v24, %v142_v12  ;;  %vm160_vm1 = vcmp.lt.s32.totalorder %v141_v14, 1  ;;  %vm163_vm2 = vcmp.lt.s32.totalorder %v141_v14, 4  ;;  %s387_s23 = smul.f32 %s553_s22, %s553_s22  ;;  %s563_s6 = sld [smem:[#allocation11 + $0x3]] }
  0x63   :  { %v144_v26 = vshrl.u32 %v728_v16, %v143_v15  ;;  %v146_v27 = vshrl.u32 %v729_v18, %v143_v15  ;;  %v149_v28 = vshrl.u32 %v730_v20, %v143_v15  ;;  %v152_v29 = vshrl.u32 %v731_v22, %v143_v15  ;;  %s429_s3 = sld [smem:[#allocation13]]  ;;  %p565_p6 = scmp.lt.s32.totalorder %s881_s0, 1024 }
  0x64   :  { %v155_v30 = vshrl.u32 %v732_v24, %v143_v15  ;;  %v158_v32 = vshrl.u32 %v733_v31, %v143_v15  ;;  %vm161_vm3 = vcmp.lt.s32.totalorder %v141_v14, 2  ;;  %vm162_vm4 = vcmp.lt.s32.totalorder %v141_v14, 3 }
  0x65   :  { %v147_v34 = vor.u32 %v146_v27, %v145_v17  ;;  %v150_v35 = vor.u32 %v149_v28, %v148_v19  ;;  %v153_v36 = vor.u32 %v152_v29, %v151_v21 }
  0x66   :  { %v156_v37 = vor.u32 %v155_v30, %v154_v23  ;;  %v159_v38 = vor.u32 %v158_v32, %v157_v25  ;;  %v341_v32 = vstv %s827_s5  ;;  %s416_s8 = smul.f32 %s560_s30, %s560_s30  ;;  %s564_s5 = sld [smem:[#allocation13 + $0x1]] }
  0x67   :  { %v164_v39 = vsel %vm160_vm1, %v144_v26, %v147_v34  ;;  %v165_v40 = vsel %vm163_vm2, %v153_v36, 2102212464  ;;  %v168_v41 = vsel %vm160_vm1, %v147_v34, %v150_v35  ;;  %v172_v42 = vsel %vm160_vm1, %v150_v35, %v153_v36 }
  0x68   :  { %v166_v43 = vsel %vm162_vm4, %v150_v35, %v165_v40  ;;  %v169_v44 = vsel %vm163_vm2, %v156_v37, 920167782  ;;  %v173_v45 = vsel %vm163_vm2, %v159_v38, 1326507024 }
  0x69   :  { %v170_v46 = vsel %vm162_vm4, %v153_v36, %v169_v44  ;;  %v174_v47 = vsel %vm162_vm4, %v156_v37, %v173_v45  ;;  %v167_v48 = vsel %vm161_vm3, %v164_v39, %v166_v43  ;;  %v348_v36 = vstv %s544_s11 }
  0x6a   :  { %v171_v49 = vsel %vm161_vm3, %v168_v41, %v170_v46  ;;  %v175_v50 = vsel %vm161_vm3, %v172_v42, %v174_v47  ;;  %v183_v55 = vmul.u32 %v176_v33, %v167_v48  ;;  %v350_v37 = vstv %s545_s12 }
  0x6b   :  { %v813_v51 = vmul.u32.u64.low %v176_v33, %v175_v50  ;;  %v814_v52 = vmul.u32.u64.high %v176_v33, %v175_v50, %v813_v51  ;;  %v816_v53 = vmul.u32.u64.low %v176_v33, %v171_v49  ;;  %v817_v54 = vmul.u32.u64.high %v176_v33, %v171_v49, %v816_v53 }
  0x6c   :  { %v343_v33 = vstv %s829_s10  ;;  %v346_v46 = vstv %s831_s13  ;;  %v353_v47 = vstv %s833_s14 }
  0x6d   :  { %vm185_vm5 = vc.u32 %v814_v52, %v816_v53  ;;  %v186_v56 = vadd.s32 1, %v817_v54  ;;  %v184_v3 = vadd.s32 %v816_v53, %v814_v52  ;;  %v359_v52 = vstv %s358_s16 }
  0x6f   :  { %v187_v57 = vsel %vm185_vm5, %v186_v56, %v817_v54  ;;  %v377_v56 = vstv %s549_s18 }
  0x70   :  { %v188_v58 = vadd.s32 %v187_v57, %v183_v55  ;;  %v370_v55 = vstv %s547_s17 }
  0x72   :  { %v189_v59 = vadd.s32 536870912, %v188_v58 }
  0x74   :  { %v190_v60 = vshrl.u32 %v189_v59, 30  ;;  %v372_v59 = vstv %s548_s19 }
  0x76   :  { %v191_v61 = vshll.u32 %v190_v60, 30  ;;  %v214_v17 = vsub.s32 4, %v190_v60 }
  0x78   :  { %v192_v62 = vsub.s32 %v188_v58, %v191_v61  ;;  %v215_v20 = vsel %vm130_vm7, %v214_v17, %v190_v60  ;;  %v379_v60 = vstv %s550_s20 }
  0x79   :  { %v217_v23 = vsel %vm129_vm8, 0, %v215_v20 }
  0x7a   :  { %v194_v63 = vsub.s32 0, %v192_v62  ;;  %v324_v24 = vadd.s32 3, %v217_v23  ;;  %v221_v25 = vand.u32 3, %v217_v23 }
  0x7c   :  { %v536_v0 = vmin.u32 %v194_v63, %v192_v62  ;;  %v325_v26 = vand.u32 3, %v324_v24  ;;  %vm226_vm9 = vcmp.eq.s32.totalorder %v221_v25, 2  ;;  %vm223_vm11 = vcmp.eq.s32.totalorder %v221_v25, 0 }
  0x7d   :  { %vm222_vm14 = vcmp.lt.s32.totalorder %v221_v25, 2  ;;  %v404_v25 = vstv %s558_s28 }
  0x7e   :  { %v196_v1 = vclz %v536_v0  ;;  %vm330_vm10 = vcmp.eq.s32.totalorder %v325_v26, 2  ;;  %vm327_vm12 = vcmp.eq.s32.totalorder %v325_v26, 0  ;;  %vm326_vm15 = vcmp.lt.s32.totalorder %v325_v26, 2 }
  0x7f   :  { %v411_v26 = vstv %s559_s29 }
  0x80   :  { %v537_v2 = vadd.s32 4294967294, %v196_v1 }
  0x82   :  { %vm538_vm6 = vcmp.lt.s32.totalorder %v537_v2, 0 }
  0x83   :  { %v199_v5 = vsel %vm538_vm6, 0, %v537_v2  ;;  %v375_v2 = vstv %s551_s21 }
  0x84   :  { %v200_v6 = vsub.s32 32, %v199_v5  ;;  %v201_v8 = vshll.u32 %v192_v62, %v199_v5  ;;  %v204_v9 = vsub.s32 4294967266, %v199_v5 }
  0x86   :  { %v202_v10 = vshrl.u32 %v184_v3, %v200_v6  ;;  %v205_v11 = vadd.s32 127, %v204_v9  ;;  %v382_v3 = vstv %s552_s2 }
  0x88   :  { %v203_v12 = vor.u32 %v202_v10, %v201_v8  ;;  %v206_v13 = vshll.u32 %v205_v11, 23  ;;  %v388_v10 = vstv %s387_s23 }
  0x8a   :  { %v207_v14 = vor.u32 4788187, %v206_v13  ;;  %v210_v15 = vcvt.s32.f32 %v203_v12 }
  0x8c   :  { %v208_v16 = vand.u32 2147483647, %v207_v14  ;;  %v399_v14 = vstv %s554_s24 }
  0x8e   :  { %v211_v18 = vmul.f32 %v210_v15, %v208_v16  ;;  %v406_v15 = vstv %s556_s25 }
  0x90   :  { %v212_v19 = vxor.u32 2147483648, %v211_v18 }
  0x92   :  { %v213_v21 = vsel %vm130_vm7, %v212_v19, %v211_v18  ;;  %v401_v18 = vstv %s555_s26  ;;  %v408_v19 = vstv %s557_s27 }
  0x93   :  { %v216_v22 = vsel %vm129_vm8, %v807_v4, %v213_v21 }
  0x94   :  { %589 = vcosq.f32 %v216_v22 }
  0x95   :  { %591 = vsinq.f32 %v216_v22 }
  0x9e   :  { %v590_v27 = vpop.eup %589 }
  0x9f   :  { %v592_v7 = vpop.eup %591  ;;  %v227_v28 = vxor.u32 2147483648, %v590_v27 }
  0xa0   :  { %v224_v29 = vxor.u32 2147483648, %v592_v7 }
  0xa1   :  { %v228_v30 = vsel %vm226_vm9, %v227_v28, %v592_v7  ;;  %v332_v31 = vsel %vm330_vm10, %v227_v28, %v592_v7 }
  0xa2   :  { %v225_v34 = vsel %vm223_vm11, %v590_v27, %v224_v29  ;;  %v329_v35 = vsel %vm327_vm12, %v590_v27, %v224_v29 }
  0xa3   :  { %v229_v38 = vsel %vm222_vm14, %v225_v34, %v228_v30  ;;  %v333_v39 = vsel %vm326_vm15, %v329_v35, %v332_v31  ;;  %v417_v30 = vstv %s416_s8  ;;  %v423_v34 = vstv %s422_s1 }
  0xa4   :  { %v230_v40 = vsel %vm220_vm13, nan, %v229_v38  ;;  %v334_v41 = vsel %vm220_vm13, nan, %v333_v39  ;;  %v433_v35 = vstv %s562_s9  ;;  %v426_v38 = vstv %s561_s4 }
  0xa5   :  { %v342_v42 = vmul.f32 %v341_v32, %v230_v40  ;;  %v344_v43 = vmul.f32 %v343_v33, %v334_v41  ;;  %v349_v44 = vmul.f32 %v348_v36, %v230_v40  ;;  %v351_v45 = vmul.f32 %v350_v37, %v334_v41 }
  0xa6   :  { %v436_v39 = vstv %s563_s6 }
  0xa7   :  { %v345_v48 = vadd.f32 %v344_v43, %v342_v42  ;;  %v352_v49 = vadd.f32 %v351_v45, %v349_v44  ;;  %v430_v45 = vstv %s429_s3 }
  0xa9   :  { %v347_v50 = vadd.f32 %v346_v46, %v345_v48  ;;  %v354_v51 = vadd.f32 %v353_v47, %v352_v49  ;;  %v440_v46 = vstv %s564_s5 }
  0xab   :  { %593 = vtanh.f32 %v347_v50  ;;  %v360_v4 = vmul.f32 %v359_v52, %v347_v50  ;;  %v362_v53 = vmul.f32 %v359_v52, %v354_v51  ;;  %v451_v52 = vld [vmem:[#allocation14 + $0x8] sm:$0xff] (!%p565_p6) }
  0xac   :  { %595 = vtanh.f32 %v354_v51  ;;  %v446_v51 = vld [vmem:[#allocation14] sm:$0xff] (!%p565_p6) }
  0xb5   :  { %v594_v54 = vpop.eup %593 }
  0xb6   :  { %v596_v57 = vpop.eup %595  ;;  %v361_v58 = vadd.f32 %v594_v54, %v360_v4  ;;  %v456_v4 = vld [vmem:[#allocation14 + $0x10] sm:$0xff] (!%p565_p6) }
  0xb7   :  { %v363_v61 = vadd.f32 %v596_v57, %v362_v53  ;;  %v464_v57 = vld [vmem:[#allocation14 + $0x20] sm:$0xff] (!%p565_p6) }
  0xb8   :  { %v371_v62 = vmul.f32 %v370_v55, %v361_v58  ;;  %v378_v63 = vmul.f32 %v377_v56, %v361_v58  ;;  %v460_v56 = vld [vmem:[#allocation14 + $0x18] sm:$0xff] (!%p565_p6)  ;;  %v468_v58 = vld [vmem:[#allocation14 + $0x28] sm:$0xff] (!%p565_p6) }
  0xb9   :  { %v373_v0 = vmul.f32 %v372_v59, %v363_v61  ;;  %v380_v1 = vmul.f32 %v379_v60, %v363_v61 }
  0xbb   :  { %v374_v5 = vadd.f32 %v373_v0, %v371_v62  ;;  %v381_v6 = vadd.f32 %v380_v1, %v378_v63 }
  0xbd   :  { %v376_v8 = vadd.f32 %v375_v2, %v374_v5  ;;  %v383_v9 = vadd.f32 %v382_v3, %v381_v6 }
  0xbf   :  { %597 = vtanh.f32 %v376_v8  ;;  %v389_v11 = vmul.f32 %v388_v10, %v376_v8  ;;  %v391_v12 = vmul.f32 %v388_v10, %v383_v9 }
  0xc0   :  { %599 = vtanh.f32 %v383_v9 }
  0xc9   :  { %v598_v13 = vpop.eup %597 }
  0xca   :  { %v600_v16 = vpop.eup %599  ;;  %v390_v17 = vadd.f32 %v598_v13, %v389_v11 }
  0xcb   :  { %v392_v20 = vadd.f32 %v600_v16, %v391_v12 }
  0xcc   :  { %v400_v21 = vmul.f32 %v399_v14, %v390_v17  ;;  %v407_v22 = vmul.f32 %v406_v15, %v390_v17 }
  0xcd   :  { %v402_v23 = vmul.f32 %v401_v18, %v392_v20  ;;  %v409_v24 = vmul.f32 %v408_v19, %v392_v20 }
  0xcf   :  { %v403_v27 = vadd.f32 %v402_v23, %v400_v21  ;;  %v410_v7 = vadd.f32 %v409_v24, %v407_v22 }
  0xd1   :  { %v405_v28 = vadd.f32 %v404_v25, %v403_v27  ;;  %v412_v29 = vadd.f32 %v411_v26, %v410_v7 }
  0xd3   :  { %601 = vtanh.f32 %v405_v28  ;;  %v418_v31 = vmul.f32 %v417_v30, %v405_v28  ;;  %v420_v32 = vmul.f32 %v417_v30, %v412_v29 }
  0xd4   :  { %603 = vtanh.f32 %v412_v29 }
  0xdd   :  { %v602_v33 = vpop.eup %601 }
  0xde   :  { %v604_v36 = vpop.eup %603  ;;  %v419_v37 = vadd.f32 %v602_v33, %v418_v31 }
  0xdf   :  { %v421_v40 = vadd.f32 %v604_v36, %v420_v32  ;;  %445 = sbr.rel (%p565_p6) target bundleno = 236 (0xec), region = 65 }
  0xe0   :  { %v424_v41 = vmul.f32 %v423_v34, %v419_v37  ;;  %v434_v42 = vmul.f32 %v433_v35, %v419_v37 }
  0xe1   :  { %v427_v43 = vmul.f32 %v426_v38, %v421_v40  ;;  %v437_v44 = vmul.f32 %v436_v39, %v421_v40 }
  0xe3   :  { %v428_v47 = vadd.f32 %v427_v43, %v424_v41  ;;  %v438_v48 = vadd.f32 %v437_v44, %v434_v42 }
  0xe5   :  { %v431_v49 = vadd.f32 %v430_v45, %v428_v47  ;;  %v441_v50 = vadd.f32 %v440_v46, %v438_v48 }
  0xe7   :  { %v448_v53 = vadd.f32 %v446_v51, %v431_v49  ;;  %v453_v54 = vadd.f32 %v451_v52, %v441_v50  ;;  %v457_v55 = vmin.f32 %v456_v4, %v431_v49  ;;  %v461_v59 = vmin.f32 %v460_v56, %v441_v50 }
  0xe8   :  { %v465_v60 = vmax.f32 %v464_v57, %v431_v49  ;;  %v469_v61 = vmax.f32 %v468_v58, %v441_v50 }
  0xe9   :  { %449 = vst [vmem:[#allocation14] sm:$0xff] %v448_v53  ;;  %454 = vst [vmem:[#allocation14 + $0x8] sm:$0xff] %v453_v54 }
  0xea   :  { %458 = vst [vmem:[#allocation14 + $0x10] sm:$0xff] %v457_v55  ;;  %462 = vst [vmem:[#allocation14 + $0x18] sm:$0xff] %v461_v59 }
  0xeb   :  { %466 = vst [vmem:[#allocation14 + $0x20] sm:$0xff] %v465_v60  ;;  %470 = vst [vmem:[#allocation14 + $0x28] sm:$0xff] %v469_v61 }
  0xec PF:  { %p566_p7 = scmp.ge.s32.totalorder %s881_s0, 1024 }
  0xed   :  { %v475_v62 = vlaneseq (!%p566_p7)  ;;  %v481_v2 = vstv (!%p566_p7), %s881_s0 }
  0xee   :  { %474 = sbr.rel (%p566_p7) target bundleno = 252 (0xfc), region = 69 }
  0xef   :  { %v476_v63 = vshrl.u32 (!%p566_p7), %v475_v62, 7  ;;  %v479_v0 = vand.u32 (!%p566_p7), 127, %v475_v62 }
  0xf0   :  { %v489_v5 = vld [vmem:[#allocation14] sm:$0xff] (!%p566_p7)  ;;  %v494_v6 = vld [vmem:[#allocation14 + $0x8] sm:$0xff] (!%p566_p7) }
  0xf1   :  { %v477_v1 = vmul.u32 (!%p566_p7), 128, %v476_v63  ;;  %v499_v8 = vld [vmem:[#allocation14 + $0x10] sm:$0xff] (!%p566_p7)  ;;  %v503_v9 = vld [vmem:[#allocation14 + $0x18] sm:$0xff] (!%p566_p7) }
  0xf2   :  { %v507_v15 = vld [vmem:[#allocation14 + $0x20] sm:$0xff] (!%p566_p7)  ;;  %v511_v16 = vld [vmem:[#allocation14 + $0x28] sm:$0xff] (!%p566_p7) }
  0xf3   :  { %v480_v3 = vadd.s32 (!%p566_p7), %v479_v0, %v477_v1 }
  0xf5   :  { %vm853_vm0 = vcmp.lt.s32.totalorder %v480_v3, %v481_v2 }
  0xf6   :  { %v483_v11 = vsel %vm853_vm0, %v431_v49, 0.0  ;;  %v484_v12 = vsel %vm853_vm0, %v441_v50, 0.0  ;;  %v485_v13 = vsel %vm853_vm0, %v431_v49, inf  ;;  %v486_v14 = vsel %vm853_vm0, %v441_v50, inf }
  0xf7   :  { %v491_v17 = vadd.f32 %v489_v5, %v483_v11  ;;  %v496_v18 = vadd.f32 %v494_v6, %v484_v12  ;;  %v500_v19 = vmin.f32 %v499_v8, %v485_v13  ;;  %v504_v20 = vmin.f32 %v503_v9, %v486_v14 }
  0xf8   :  { %v487_v21 = vsel %vm853_vm0, %v431_v49, -inf  ;;  %v488_v22 = vsel %vm853_vm0, %v441_v50, -inf }
  0xf9   :  { %492 = vst [vmem:[#allocation14] sm:$0xff] %v491_v17  ;;  %497 = vst [vmem:[#allocation14 + $0x8] sm:$0xff] %v496_v18  ;;  %v508_v23 = vmax.f32 %v507_v15, %v487_v21  ;;  %v512_v24 = vmax.f32 %v511_v16, %v488_v22 }
  0xfa   :  { %501 = vst [vmem:[#allocation14 + $0x10] sm:$0xff] %v500_v19  ;;  %505 = vst [vmem:[#allocation14 + $0x18] sm:$0xff] %v504_v20 }
  0xfb   :  { %509 = vst [vmem:[#allocation14 + $0x20] sm:$0xff] %v508_v23  ;;  %513 = vst [vmem:[#allocation14 + $0x28] sm:$0xff] %v512_v24 }
  0xfc PF:  { %s734_s0 = smov [#allocation14]  }
  0xfd   :  { %s519_s16 = sshll.u32 %s734_s0, 4  ;;  %s520_s16 = int_to_ptr.vmem [resolvable:$true] %s519_s16 }
  0xfe   :  { %s687_s17 = scalar_lea.vmem %s520_s16, 768  ;;  %p692_p9 = scmp.lt.s32.totalorder %s520_s16, %s520_s16 }
  0xff   :  { %p688_p8 = scmp.ne.s32.totalorder %s520_s16, %s687_s17  ;;  %p693_p10 = scmp.lt.s32.totalorder %s687_s17, %s687_s17 }
 0x101   :  { %p694_p11 = por %p693_p10, %p692_p9 }
 0x103   :  { %p695_p12 = pnand %p694_p11, %p688_p8 }
 0x105   :  { %698 = shalt.err (!%p695_p12)
}
 0x106   :  { %s699_s20 = scalar_lea.hbm %s888_s7, 768 }
 0x107   :  { %p700_p13 = scmp.ne.s32.totalorder %s888_s7, %s699_s20  ;;  %p703_p0 = scmp.lt.u32.totalorder %s699_s20, %s888_s7 }
 0x109   :  { %p705_p1 = pnand %p703_p0, %p700_p13 }
 0x10b   :  { %708 = shalt.err (!%p705_p1)
}
 0x10c   :  { %s735_s24 = smov 128   ;;  %s736_s25 = smov 8  }
 0x10d   :  { %525 = dma.vmem_to_hbm [thread:$0]  %s520_s16, 768, %s888_s7, [#allocation5], %s735_s24, %s735_s24, %s736_s25  }
 0x10e   :  { %717 = dma.done.wait [#allocation5], 768  }
 0x10f   :  { %718 = vsyncadd [#allocation5], 4294966528 }
 0x110   :  { %529 = vsyncpa [#allocation4], 1 }
 0x111   :  { %530 = vsyncpa [#allocation5], 1 }
 0x112   :  { %531 = vsyncpa [#allocation6], 1 }
 0x113   :  { %532 = vsyncpa [#allocation9], 1 }
 0x114   :  { %533 = vsyncpa [#allocation12], 1 }

</bundles_post_ra>
